<compile_context>
chip_gen: v7x
topology: tpu7x:2x2x1
jax: 0.10.0
libtpu: 0.0.40
codegen_flags: <defaults>
</compile_context>

<pallas_src>
import math

import jax
import jax.numpy as jnp
from jax.experimental import pallas as pl
from jax.experimental.pallas import tpu as pltpu


def _rope_kernel(x_ref, cos_ref, sin_ref, perm_ref, out_ref):
    """out = x * cos2 + pair_swap_signed(x) * sin2 on a (tile_r, width) slab."""
    x = x_ref[...].astype(jnp.float32)        # (tile_r, width), native dtype in HBM
    c = cos_ref[...]                          # (tile_r, width) f32
    s = sin_ref[...]                          # (tile_r, width) f32
    p = perm_ref[...]                         # (width, width) f32, +-1 pair swap
    # rot[:, 2i] = -x[:, 2i+1] ; rot[:, 2i+1] = x[:, 2i]  (exact: one +-1 term/column)
    rot = jnp.dot(x, p, preferred_element_type=jnp.float32)
    out_ref[...] = (x * c + rot * s).astype(out_ref.dtype)


def _pair_swap_matrix(width: int) -> jnp.ndarray:
    """P such that (x @ P)[:, 2i] = -x[:, 2i+1] and (x @ P)[:, 2i+1] = x[:, 2i]."""
    r = jnp.arange(width)[:, None]
    c = jnp.arange(width)[None, :]
    plus = ((r % 2 == 0) & (c == r + 1)).astype(jnp.float32)
    minus = ((r % 2 == 1) & (c == r - 1)).astype(jnp.float32)
    return plus - minus


class RotaryPositionalEmbedding:
    """Mirror of the PyTorch module's forward semantics."""

    def __init__(self, theta: float, d_k: int, max_seq_len: int):
        assert d_k % 2 == 0, "RoPE requires an even d_k"
        self.theta = float(theta)
        self.d_k = d_k
        self.max_seq_len = max_seq_len
        position = jnp.arange(max_seq_len, dtype=jnp.float32)[:, None]      # (L, 1)
        k = jnp.arange(0, d_k, 2, dtype=jnp.float32)                        # (d_k//2,)
        angles = position * (1.0 / (self.theta ** (k / d_k)))               # (L, d_k//2)
        self.sin = jnp.sin(angles)
        self.cos = jnp.cos(angles)
        # Interleave-expanded tables: value for frequency i sits at lanes 2i, 2i+1.
        self.cos2 = jnp.repeat(self.cos, 2, axis=-1)                        # (L, d_k)
        self.sin2 = jnp.repeat(self.sin, 2, axis=-1)                        # (L, d_k)

    def __call__(self, x: jnp.ndarray, token_positions: jnp.ndarray) -> jnp.ndarray:
        d_k = self.d_k
        assert x.shape[-1] == d_k
        x_lead = x.shape[:-1]
        n_rows = math.prod(x_lead) if x_lead else 1

        # clamp + gather table rows (small: prod(token_positions.shape) x d_k)
        tp = jnp.clip(token_positions, 0, self.max_seq_len - 1).astype(jnp.int32)
        cos_g = self.cos2[tp]                        # tp.shape + (d_k,)
        sin_g = self.sin2[tp]

        # Factor the torch broadcast into (outer reps, inner rows) so the table is
        # NOT replicated across heads/batch in HBM; the index_map reuses it instead.
        t_shape = tp.shape
        k_match = 0
        while (k_match < len(t_shape) and k_match < len(x_lead)
               and t_shape[len(t_shape) - 1 - k_match] == x_lead[len(x_lead) - 1 - k_match]):
            k_match += 1
        clean = k_match >= 1 and all(d == 1 for d in t_shape[:len(t_shape) - k_match])
        if clean:
            r_inner = math.prod(x_lead[len(x_lead) - k_match:])
            r_outer = n_rows // r_inner
        else:
            # Unusual broadcast pattern: fall back to materializing (still correct).
            cos_g = jnp.broadcast_to(cos_g, x_lead + (d_k,))
            sin_g = jnp.broadcast_to(sin_g, x_lead + (d_k,))
            r_inner, r_outer = n_rows, 1

        # Fold consecutive rows into lanes so the block's last dim is 128-wide
        # (lane-dense loads/stores).  Free reshapes: pure row-major regrouping.
        fold = 1
        if d_k < 128 and 128 % d_k == 0:
            fold = 128 // d_k
            while fold > 1 and r_inner % fold != 0:
                fold //= 2
        width = fold * d_k
        rows = r_inner // fold

        x3 = x.reshape(r_outer, rows, width)
        tab_c = cos_g.reshape(rows, width).astype(jnp.float32)
        tab_s = sin_g.reshape(rows, width).astype(jnp.float32)
        perm = _pair_swap_matrix(width)

        # Row tiling: up to 1024 rows per block (multiple of 8) -> good pipelining
        # while the double-buffered working set stays a few MiB (fits v7x VMEM).
        tile_r = rows if rows <= 1024 else 1024
        n_row_tiles = pl.cdiv(rows, tile_r)
        # Outer (fastest) grid axis walks the batch/head repeats, so the table
        # block index only changes with the slow axis and is fetched ~once.
        grid = (n_row_tiles, r_outer)

        x_spec = pl.BlockSpec((None, tile_r, width), lambda i, o: (o, i, 0))
        tab_spec = pl.BlockSpec((tile_r, width), lambda i, o: (i, 0))
        perm_spec = pl.BlockSpec((width, width), lambda i, o: (0, 0))
        out_spec = pl.BlockSpec((None, tile_r, width), lambda i, o: (o, i, 0))

        itemsize = jnp.dtype(x.dtype).itemsize
        cost = pl.CostEstimate(
            flops=int(r_outer * rows * (2 * width * width + 3 * width)),
            transcendentals=0,
            bytes_accessed=int(2 * n_rows * d_k * itemsize      # x in + out
                               + 2 * rows * width * 4           # cos/sin (read once)
                               + width * width * 4),            # perm matrix
        )

        out3 = pl.pallas_call(
            _rope_kernel,
            grid=grid,
            in_specs=[x_spec, tab_spec, tab_spec, perm_spec],
            out_specs=out_spec,
            out_shape=jax.ShapeDtypeStruct((r_outer, rows, width), x.dtype),
            compiler_params=pltpu.CompilerParams(
                dimension_semantics=("parallel", "parallel")),
            cost_estimate=cost,
        )(x3, tab_c, tab_s, perm)

        return out3.reshape(x.shape)


def _rope_reference(x, token_positions, theta, d_k, max_seq_len):
    """Pure-JAX reference (direct transcription of the PyTorch forward)."""
    position = jnp.arange(max_seq_len, dtype=jnp.float32)[:, None]
    k = jnp.arange(0, d_k, 2, dtype=jnp.float32)
    angles = position * (1.0 / (theta ** (k / d_k)))
    sin_t, cos_t = jnp.sin(angles), jnp.cos(angles)
    tp = jnp.clip(token_positions, 0, max_seq_len - 1).astype(jnp.int32)
    sin = jnp.take(sin_t, tp, axis=0)
    cos = jnp.take(cos_t, tp, axis=0)
    x_even, x_odd = x[..., 0::2], x[..., 1::2]
    r_even = x_even * cos - x_odd * sin
    r_odd = x_even * sin + x_odd * cos
    return jnp.stack([r_even, r_odd], axis=-1).reshape(x.shape)


if __name__ == "__main__":
    theta = 10000.0
    d_k = 32
    max_seq_len = 32
    batch, seq = 2, 16

    key = jax.random.PRNGKey(0)
    kx, _ = jax.random.split(key)
    x = jax.random.normal(kx, (batch, seq, d_k), dtype=jnp.float32)
    token_positions = jnp.broadcast_to(jnp.arange(seq, dtype=jnp.int32), (batch, seq))

    rope = RotaryPositionalEmbedding(theta, d_k, max_seq_len)
    out = jax.block_until_ready(rope(x, token_positions))

    ref = _rope_reference(x, token_positions, theta, d_k, max_seq_len)
    assert out.shape == x.shape and out.dtype == x.dtype
    assert jnp.allclose(out, ref, atol=1e-5, rtol=1e-5), "mismatch vs reference"

    print("KERNEL_OK")
</pallas_src>

<mosaic_0001>
module attributes {stable_mosaic.version = 11 : i64} {
  func.func @_rope_kernel(%arg0: i32, %arg1: i32, %arg2: memref<1x8x128xf32, #tpu.memory_space<vmem>>, %arg3: memref<8x128xf32, #tpu.memory_space<vmem>>, %arg4: memref<8x128xf32, #tpu.memory_space<vmem>>, %arg5: memref<128x128xf32, #tpu.memory_space<vmem>>, %arg6: memref<1x8x128xf32, #tpu.memory_space<vmem>>) attributes {dimension_semantics = [#tpu.dimension_semantics<parallel>, #tpu.dimension_semantics<parallel>], iteration_bounds = array<i64: 1, 1>, scalar_prefetch = 0 : i64, scratch_operands = 0 : i64, tpu.core_type = #tpu.core_type<tc>, window_params = [{transform_indices = @transform_0, window_bounds = array<i64: 1, 8, 128>}, {transform_indices = @transform_1, window_bounds = array<i64: 8, 128>}, {transform_indices = @transform_2, window_bounds = array<i64: 8, 128>}, {pipeline_mode = #tpu.pipeline_mode<synchronous>, transform_indices = @transform_3, window_bounds = array<i64: 128, 128>}, {transform_indices = @transform_4, window_bounds = array<i64: 1, 8, 128>}]} {
    %c0 = arith.constant 0 : index
    %c0_0 = arith.constant 0 : index
    %c0_1 = arith.constant 0 : index
    %0 = vector.load %arg2[%c0, %c0_0, %c0_1] : memref<1x8x128xf32, #tpu.memory_space<vmem>>, vector<1x8x128xf32>
    %1 = vector.shape_cast %0 : vector<1x8x128xf32> to vector<8x128xf32>
    %c0_2 = arith.constant 0 : index
    %c0_3 = arith.constant 0 : index
    %2 = vector.load %arg3[%c0_2, %c0_3] : memref<8x128xf32, #tpu.memory_space<vmem>>, vector<8x128xf32>
    %c0_4 = arith.constant 0 : index
    %c0_5 = arith.constant 0 : index
    %3 = vector.load %arg4[%c0_4, %c0_5] : memref<8x128xf32, #tpu.memory_space<vmem>>, vector<8x128xf32>
    %c0_6 = arith.constant 0 : index
    %c0_7 = arith.constant 0 : index
    %4 = vector.load %arg5[%c0_6, %c0_7] : memref<128x128xf32, #tpu.memory_space<vmem>>, vector<128x128xf32>
    %cst = arith.constant dense<0.000000e+00> : vector<8x128xf32>
    %5 = tpu.matmul %1, %4, %cst {dimension_numbers = #tpu.dot_dimension_numbers<[1], [0], [0], [1], [0, 0, 1, 1], [], []>} : vector<8x128xf32>, vector<128x128xf32>, vector<8x128xf32> -> vector<8x128xf32>
    %6 = arith.mulf %1, %2 : vector<8x128xf32>
    %7 = arith.mulf %5, %3 : vector<8x128xf32>
    %8 = arith.addf %6, %7 : vector<8x128xf32>
    %c0_8 = arith.constant 0 : index
    %c0_9 = arith.constant 0 : index
    %c0_10 = arith.constant 0 : index
    %9 = vector.load %arg6[%c0_8, %c0_9, %c0_10] : memref<1x8x128xf32, #tpu.memory_space<vmem>>, vector<1x8x128xf32>
    %10 = vector.shape_cast %9 : vector<1x8x128xf32> to vector<8x128xf32>
    %11 = vector.shape_cast %8 : vector<8x128xf32> to vector<1x8x128xf32>
    tpu.vector_store %arg6[%c0_8, %c0_9, %c0_10], %11 {strides = array<i32>} : memref<1x8x128xf32, #tpu.memory_space<vmem>>, vector<1x8x128xf32>,
    return
  }
  func.func @transform_0(%arg0: i32, %arg1: i32) -> (i32, i32, i32) {
    %c0_i32 = arith.constant 0 : i32
    %c0_i32_0 = arith.constant 0 : i32
    return %arg1, %arg0, %c0_i32 : i32, i32, i32
  }
  func.func @transform_1(%arg0: i32, %arg1: i32) -> (i32, i32) {
    %c0_i32 = arith.constant 0 : i32
    %c0_i32_0 = arith.constant 0 : i32
    return %arg0, %c0_i32 : i32, i32
  }
  func.func @transform_2(%arg0: i32, %arg1: i32) -> (i32, i32) {
    %c0_i32 = arith.constant 0 : i32
    %c0_i32_0 = arith.constant 0 : i32
    return %arg0, %c0_i32 : i32, i32
  }
  func.func @transform_3(%arg0: i32, %arg1: i32) -> (i32, i32) {
    %c0_i32 = arith.constant 0 : i32
    %c0_i32_0 = arith.constant 0 : i32
    %c0_i32_1 = arith.constant 0 : i32
    return %c0_i32, %c0_i32_0 : i32, i32
  }
  func.func @transform_4(%arg0: i32, %arg1: i32) -> (i32, i32, i32) {
    %c0_i32 = arith.constant 0 : i32
    %c0_i32_0 = arith.constant 0 : i32
    return %arg1, %arg0, %c0_i32 : i32, i32, i32
  }
}

</mosaic_0001>

<bundles_post_ra>
// kernel: tpu_custom_call.1
= control target key start
LH: loop header
LB: loop body
LE: loop exit
PB: predicated region body
PF: predicated region fallthrough
CT: control target
= control target key end

     0   :  { %9 = vsyncpa [#allocation3], 0  ;;  %s483_s0 = inlined_call_operand.hbm [shape: f32[1,8,128], index: 0, kind: input, shape index: {}]   ;;  %s484_s1 = inlined_call_operand.hbm [shape: f32[8,128], index: 1, kind: input, shape index: {}]   ;;  %s485_s2 = inlined_call_operand.hbm [shape: f32[8,128], index: 2, kind: input, shape index: {}]   ;;  %s486_s3 = inlined_call_operand.hbm [shape: f32[128,128], index: 3, kind: input, shape index: {}]   ;;  %s487_s4 = inlined_call_operand.hbm [shape: f32[1,8,128], index: 4, kind: output, shape index: {}]  }
   0x1   :  { %10 = vsyncpa [#allocation6], 0 }
   0x2   :  { %11 = vsyncpa [#allocation9], 0 }
   0x3   :  { %12 = vsyncpa [#allocation4], 0  ;;  %s381_s15 = smov [#allocation5]   ;;  %s382_s17 = smov [#allocation2]  }
   0x4   :  { %s29_s16 = sshll.u32 %s381_s15, 4  ;;  %s19_s18 = sshll.u32 %s382_s17, 4  ;;  %s30_s16 = int_to_ptr.vmem [resolvable:$true] %s29_s16  ;;  %s20_s18 = int_to_ptr.vmem [resolvable:$true] %s19_s18 }
   0x5   :  { %s263_s21 = scalar_lea.hbm %s484_s1, 128 }
   0x6   :  { %p264_p0 = scmp.ne.s32.totalorder %s484_s1, %s263_s21  ;;  %p267_p1 = scmp.lt.u32.totalorder %s263_s21, %s484_s1 }
   0x8   :  { %p269_p2 = pnand %p267_p1, %p264_p0 }
   0xa   :  { %272 = shalt.err (!%p269_p2)
}
   0xb   :  { %s273_s26 = scalar_lea.vmem %s30_s16, 128  ;;  %p278_p4 = scmp.lt.s32.totalorder %s30_s16, %s30_s16 }
   0xc   :  { %p274_p3 = scmp.ne.s32.totalorder %s30_s16, %s273_s26  ;;  %p279_p5 = scmp.lt.s32.totalorder %s273_s26, %s273_s26 }
   0xe   :  { %p280_p6 = por %p279_p5, %p278_p4 }
  0x10   :  { %p281_p7 = pnand %p280_p6, %p274_p3 }
  0x12   :  { %284 = shalt.err (!%p281_p7)
}
  0x13   :  { %32 = dma.hbm_to_vmem [thread:$0]  %s484_s1, 128, %s30_s16, [#allocation6]  }
  0x14   :  { %s285_s5 = scalar_lea.hbm %s483_s0, 128 }
  0x15   :  { %p286_p8 = scmp.ne.s32.totalorder %s483_s0, %s285_s5  ;;  %p289_p9 = scmp.lt.u32.totalorder %s285_s5, %s483_s0 }
  0x17   :  { %p291_p10 = pnand %p289_p9, %p286_p8 }
  0x19   :  { %294 = shalt.err (!%p291_p10)
}
  0x1a   :  { %s295_s10 = scalar_lea.vmem %s20_s18, 128  ;;  %p300_p12 = scmp.lt.s32.totalorder %s20_s18, %s20_s18 }
  0x1b   :  { %p296_p11 = scmp.ne.s32.totalorder %s20_s18, %s295_s10  ;;  %p301_p13 = scmp.lt.s32.totalorder %s295_s10, %s295_s10 }
  0x1d   :  { %p302_p0 = por %p301_p13, %p300_p12 }
  0x1f   :  { %p303_p1 = pnand %p302_p0, %p296_p11 }
  0x21   :  { %306 = shalt.err (!%p303_p1)
}
  0x22   :  { %22 = dma.hbm_to_vmem [thread:$0]  %s483_s0, 128, %s20_s18, [#allocation3]  }
  0x23   :  { %s383_s12 = smov [#allocation7]   ;;  %s384_s14 = smov [#allocation8]  }
  0x24   :  { %s39_s13 = sshll.u32 %s383_s12, 4  ;;  %s48_s15 = sshll.u32 %s384_s14, 4  ;;  %s40_s13 = int_to_ptr.vmem [resolvable:$true] %s39_s13  ;;  %s440_s15 = int_to_ptr.vmem [resolvable:$true] %s48_s15 }
  0x25   :  { %s307_s19 = scalar_lea.hbm %s485_s2, 128 }
  0x26   :  { %p308_p2 = scmp.ne.s32.totalorder %s485_s2, %s307_s19  ;;  %p311_p3 = scmp.lt.u32.totalorder %s307_s19, %s485_s2 }
  0x28   :  { %p313_p4 = pnand %p311_p3, %p308_p2 }
  0x2a   :  { %316 = shalt.err (!%p313_p4)
}
  0x2b   :  { %s317_s0 = scalar_lea.vmem %s40_s13, 128  ;;  %p322_p6 = scmp.lt.s32.totalorder %s40_s13, %s40_s13 }
  0x2c   :  { %p318_p5 = scmp.ne.s32.totalorder %s40_s13, %s317_s0  ;;  %p323_p7 = scmp.lt.s32.totalorder %s317_s0, %s317_s0 }
  0x2e   :  { %p324_p8 = por %p323_p7, %p322_p6 }
  0x30   :  { %p325_p9 = pnand %p324_p8, %p318_p5 }
  0x32   :  { %328 = shalt.err (!%p325_p9)
}
  0x33   :  { %42 = dma.hbm_to_vmem [thread:$0]  %s485_s2, 128, %s40_s13, [#allocation6]  }
  0x34   :  { %s329_s27 = scalar_lea.hbm %s486_s3, 2048 }
  0x35   :  { %p330_p10 = scmp.ne.s32.totalorder %s486_s3, %s329_s27  ;;  %p333_p11 = scmp.lt.u32.totalorder %s329_s27, %s486_s3 }
  0x37   :  { %p335_p12 = pnand %p333_p11, %p330_p10 }
  0x39   :  { %338 = shalt.err (!%p335_p12)
}
  0x3a   :  { %s339_s6 = scalar_lea.vmem %s440_s15, 2048  ;;  %p344_p0 = scmp.lt.s32.totalorder %s440_s15, %s440_s15 }
  0x3b   :  { %p340_p13 = scmp.ne.s32.totalorder %s440_s15, %s339_s6  ;;  %p345_p1 = scmp.lt.s32.totalorder %s339_s6, %s339_s6 }
  0x3d   :  { %p346_p2 = por %p345_p1, %p344_p0 }
  0x3f   :  { %p347_p3 = pnand %p346_p2, %p340_p13 }
  0x41   :  { %350 = shalt.err (!%p347_p3)
}
  0x42   :  { %s385_s2 = smov 128   ;;  %s386_s7 = smov 8  }
  0x43   :  { %54 = dma.hbm_to_vmem [thread:$0]  %s486_s3, 2048, %s440_s15, [#allocation9], %s385_s2, %s385_s2, %s386_s7  }
  0x44   :  { %373 = dma.done.wait [#allocation3], 128  }
  0x45   :  { %374 = vsyncadd [#allocation3], 4294967168 }
  0x46   :  { %375 = dma.done.wait [#allocation6], 256  }
  0x47   :  { %376 = vsyncadd [#allocation6], 4294967040 }
  0x48   :  { %377 = dma.done.wait [#allocation9], 2048  }
  0x49   :  { %378 = vsyncadd [#allocation9], 4294965248  ;;  %v387_v0 = vmov 0.0|0.0   ;;  %vm388_vm0 = vmmov 0   ;;  %v389_v1 = vmov 0.0   ;;  %v70_v2 = vld [vmem:[#allocation8] sm:$0xff] }
  0x4a   :  { %229 = vmatprep.subr.bf16.mxu0 %v387_v0  ;;  %226 = vmatprep.mubr.msk.f32.mxu0 %vm388_vm0, %v389_v1  ;;  %v71_v3 = vld [vmem:[#allocation8 + $0x8] sm:$0xff]  ;;  %v72_v4 = vld [vmem:[#allocation8 + $0x10] sm:$0xff]  ;;  %v73_v6 = vld [vmem:[#allocation8 + $0x18] sm:$0xff]  ;;  %s390_s3 = smov [#allocation10]  }
  0x4b   :  { %v230_v5 = vpack.c.bf16 %v71_v3, %v70_v2  ;;  %v233_v7 = vpack.c.bf16 %v73_v6, %v72_v4  ;;  %v74_v8 = vld [vmem:[#allocation8 + $0x20] sm:$0xff]  ;;  %v75_v9 = vld [vmem:[#allocation8 + $0x28] sm:$0xff]  ;;  %v76_v11 = vld [vmem:[#allocation8 + $0x30] sm:$0xff]  ;;  %s166_s10 = sshll.u32 %s390_s3, 4  ;;  %s167_s10 = int_to_ptr.vmem [resolvable:$true] %s166_s10 }
  0x4c   :  { %v236_v10 = vpack.c.bf16 %v75_v9, %v74_v8  ;;  %v77_v12 = vld [vmem:[#allocation8 + $0x38] sm:$0xff]  ;;  %v78_v14 = vld [vmem:[#allocation8 + $0x40] sm:$0xff]  ;;  %v79_v15 = vld [vmem:[#allocation8 + $0x48] sm:$0xff]  ;;  %s351_s1 = scalar_lea.vmem %s167_s10, 128  ;;  %p356_p5 = scmp.lt.s32.totalorder %s167_s10, %s167_s10 }
  0x4d   :  { %231 = vmatpush3.bf16.msra.mxu0 %v230_v5  ;;  %v239_v13 = vpack.c.bf16 %v77_v12, %v76_v11  ;;  %v242_v16 = vpack.c.bf16 %v79_v15, %v78_v14  ;;  %v80_v17 = vld [vmem:[#allocation8 + $0x50] sm:$0xff]  ;;  %v81_v18 = vld [vmem:[#allocation8 + $0x58] sm:$0xff]  ;;  %v82_v20 = vld [vmem:[#allocation8 + $0x60] sm:$0xff]  ;;  %p352_p4 = scmp.ne.s32.totalorder %s167_s10, %s351_s1  ;;  %p357_p6 = scmp.lt.s32.totalorder %s351_s1, %s351_s1 }
  0x4e   :  { %232 = vmatprep.subr.bf16.mxu0 %v387_v0  ;;  %v245_v19 = vpack.c.bf16 %v81_v18, %v80_v17  ;;  %v83_v21 = vld [vmem:[#allocation8 + $0x68] sm:$0xff]  ;;  %v84_v23 = vld [vmem:[#allocation8 + $0x70] sm:$0xff]  ;;  %v85_v24 = vld [vmem:[#allocation8 + $0x78] sm:$0xff] }
  0x4f   :  { %v248_v22 = vpack.c.bf16 %v83_v21, %v82_v20  ;;  %v251_v25 = vpack.c.bf16 %v85_v24, %v84_v23  ;;  %v67_v26 = vld [vmem:[#allocation2] sm:$0xff]  ;;  %v68_v27 = vld [vmem:[#allocation5] sm:$0xff]  ;;  %v69_v28 = vld [vmem:[#allocation7] sm:$0xff]  ;;  %p358_p7 = por %p357_p6, %p356_p5 }
  0x50   :  { %v156_v29 = vmul.f32 %v68_v27, %v67_v26 }
  0x51   :  { %234 = vmatpush3.bf16.msra.mxu0 %v233_v7  ;;  %p359_p8 = pnand %p358_p7, %p352_p4 }
  0x52   :  { %235 = vmatprep.subr.bf16.mxu0 %v387_v0 }
  0x55   :  { %237 = vmatpush3.bf16.msra.mxu0 %v236_v10 }
  0x56   :  { %238 = vmatprep.subr.bf16.mxu0 %v387_v0 }
  0x59   :  { %240 = vmatpush3.bf16.msra.mxu0 %v239_v13 }
  0x5a   :  { %241 = vmatprep.subr.bf16.mxu0 %v387_v0 }
  0x5d   :  { %243 = vmatpush3.bf16.msra.mxu0 %v242_v16 }
  0x5e   :  { %244 = vmatprep.subr.bf16.mxu0 %v387_v0 }
  0x61   :  { %246 = vmatpush3.bf16.msra.mxu0 %v245_v19 }
  0x62   :  { %247 = vmatprep.subr.bf16.mxu0 %v387_v0 }
  0x65   :  { %249 = vmatpush3.bf16.msra.mxu0 %v248_v22 }
  0x66   :  { %250 = vmatprep.subr.bf16.mxu0 %v387_v0 }
  0x69   :  { %252 = vmatpush3.bf16.msra.mxu0 %v251_v25 }
  0x6c   :  { %227 = vmatmul.mubr.f32.vlgmr.msra.gmra.mrb[0].mxu0 %v67_v26 }
 0x13f   :  { %v152_v30 = vpop.f32.mrb[0].mxu0 }
 0x140   :  { %v157_v31 = vmul.f32 %v152_v30, %v69_v28  ;;  %v228_v32 = vpop.f32.mrb[1].mxu0 }
 0x142   :  { %v158_v33 = vadd.f32 %v157_v31, %v156_v29 }
 0x144   :  { %159 = vst [vmem:[#allocation10] sm:$0xff] %v158_v33 }
 0x145   :  { %362 = shalt.err (!%p359_p8)
}
 0x146   :  { %s363_s13 = scalar_lea.hbm %s487_s4, 128 }
 0x147   :  { %p364_p9 = scmp.ne.s32.totalorder %s487_s4, %s363_s13  ;;  %p367_p10 = scmp.lt.u32.totalorder %s363_s13, %s487_s4 }
 0x149   :  { %p369_p11 = pnand %p367_p10, %p364_p9 }
 0x14b   :  { %372 = shalt.err (!%p369_p11)
}
 0x14c   :  { %169 = dma.vmem_to_hbm [thread:$0]  %s167_s10, 128, %s487_s4, [#allocation4]  }
 0x14d   :  { %379 = dma.done.wait [#allocation4], 128  }
 0x14e   :  { %380 = vsyncadd [#allocation4], 4294967168 }
 0x14f   :  { %173 = vsyncpa [#allocation3], 1 }
 0x150   :  { %174 = vsyncpa [#allocation6], 1 }
 0x151   :  { %175 = vsyncpa [#allocation9], 1 }
 0x152   :  { %176 = vsyncpa [#allocation4], 1 }

</bundles_post_ra>
